<compile_context>
chip_gen: v5e
topology: v5e:2x2
jax: 0.10.0
libtpu: 0.0.40
codegen_flags: <defaults>
</compile_context>

<pallas_src>
import math
import functools

import jax
import jax.numpy as jnp
from jax.experimental import pallas as pl
from jax.experimental.pallas import tpu as pltpu


def _layer_norm(x, gamma, beta, eps=1e-5):
    # x: (T, D) fp32; gamma/beta: (1, D). Biased variance, matching torch.nn.LayerNorm.
    mu = jnp.mean(x, axis=-1, keepdims=True)
    var = jnp.mean((x - mu) * (x - mu), axis=-1, keepdims=True)
    return (x - mu) * jax.lax.rsqrt(var + eps) * gamma + beta


def block_kernel(x_full_ref, x_q_ref,
                 wq_ref, bq_ref, wkv_ref, bkv_ref,
                 wo_ref, bo_ref,
                 w1_ref, b1_ref, w2_ref, b2_ref,
                 g1_ref, be1_ref, g2_ref, be2_ref,
                 o_ref, *, n_heads):
    x_full = x_full_ref[0]                  # (S, D)  fp32, whole sequence (for K/V)
    x_q = x_q_ref[0]                        # (TQ, D) fp32, current query tile
    S, D = x_full.shape
    TQ = x_q.shape[0]
    H = n_heads
    dh = D // H

    xq_bf = x_q.astype(jnp.bfloat16)
    xf_bf = x_full.astype(jnp.bfloat16)

    # Q projection on the query tile (1/sqrt(d_head) already folded into wq/bq).
    q = jnp.dot(xq_bf, wq_ref[...], preferred_element_type=jnp.float32) + bq_ref[...]
    # Fused K|V projection on the full sequence: one (S,D)x(D,2D) MXU matmul.
    kv = jnp.dot(xf_bf, wkv_ref[...], preferred_element_type=jnp.float32) + bkv_ref[...]

    # Per-head attention; accumulate each head straight through the matching rows of
    # the output projection (no lane-axis concat, short live ranges).
    attn = jnp.zeros((TQ, D), dtype=jnp.float32)
    for h in range(H):                       # static unroll over heads
        lo = h * dh
        qh = q[:, lo:lo + dh].astype(jnp.bfloat16)                 # (TQ, dh)
        kh = kv[:, lo:lo + dh].astype(jnp.bfloat16)                # (S, dh)
        vh = kv[:, D + lo:D + lo + dh].astype(jnp.bfloat16)        # (S, dh)

        s = jax.lax.dot_general(qh, kh, (((1,), (1,)), ((), ())),
                                preferred_element_type=jnp.float32)  # (TQ, S)
        s = s - jnp.max(s, axis=-1, keepdims=True)
        p = jnp.exp(s)
        p = p * pl.reciprocal(jnp.sum(p, axis=-1, keepdims=True), approx=True)
        # TODO(synk): attention-prob dropout omitted (eval mode / identity).

        ctx = jnp.dot(p.astype(jnp.bfloat16), vh,
                      preferred_element_type=jnp.float32)            # (TQ, dh)
        attn = attn + jnp.dot(ctx.astype(jnp.bfloat16),
                              wo_ref[pl.ds(lo, dh), :],
                              preferred_element_type=jnp.float32)
    attn = attn + bo_ref[...]
    # TODO(synk): residual dropout1/dropout2 omitted (eval mode / identity).

    # ---- residual + LayerNorm 1 ----------------------------------------
    h1 = _layer_norm(x_q + attn, g1_ref[...], be1_ref[...])

    # ---- feed forward ----------------------------------------------------
    ff = jnp.dot(h1.astype(jnp.bfloat16), w1_ref[...],
                 preferred_element_type=jnp.float32) + b1_ref[...]
    ff = jnp.maximum(ff, 0.0)
    ff = jnp.dot(ff.astype(jnp.bfloat16), w2_ref[...],
                 preferred_element_type=jnp.float32) + b2_ref[...]

    # ---- residual + LayerNorm 2 ----------------------------------------
    out = _layer_norm(h1 + ff, g2_ref[...], be2_ref[...])
    o_ref[0] = out.astype(o_ref.dtype)


def _pick_tq(seq_len):
    # Full sequence for small S; otherwise the largest nice divisor (multiple of 8).
    if seq_len <= 128:
        return seq_len
    for t in (256, 128, 64, 32, 16, 8):
        if seq_len % t == 0:
            return t
    return seq_len


def block_forward(x, params, n_heads):
    B, S, D = x.shape
    assert D % n_heads == 0, "d_model must be divisible by n_heads"
    d_ff = params["w1"].shape[1]
    dh = D // n_heads
    scale = 1.0 / math.sqrt(dh)

    # --- host-side weight packing / preconditioning ---------------------
    #  * fold 1/sqrt(d_head) into the Q projection,
    #  * fuse K|V into a single (D, 2D) weight,
    #  * matmul weights in bf16 (half DMA/VMEM), biases & LN params fp32.
    wq = (params["wq"] * scale).astype(jnp.bfloat16)
    bq = (params["bq"] * scale).astype(jnp.float32)
    wkv = jnp.concatenate([params["wk"], params["wv"]], axis=1).astype(jnp.bfloat16)
    bkv = jnp.concatenate([params["bk"], params["bv"]], axis=1).astype(jnp.float32)
    wo = params["wo"].astype(jnp.bfloat16)
    bo = params["bo"].astype(jnp.float32)
    w1 = params["w1"].astype(jnp.bfloat16)
    b1 = params["b1"].astype(jnp.float32)
    w2 = params["w2"].astype(jnp.bfloat16)
    b2 = params["b2"].astype(jnp.float32)
    g1 = params["gamma1"].astype(jnp.float32)
    be1 = params["beta1"].astype(jnp.float32)
    g2 = params["gamma2"].astype(jnp.float32)
    be2 = params["beta2"].astype(jnp.float32)

    tq = _pick_tq(S)
    n_q = S // tq

    res = lambda shape: pl.BlockSpec(shape, lambda b, qi: (0, 0))   # grid-resident
    in_specs = [
        pl.BlockSpec((1, S, D), lambda b, qi: (b, 0, 0)),    # x (full seq, for K/V)
        pl.BlockSpec((1, tq, D), lambda b, qi: (b, qi, 0)),  # x (query tile)
        res((D, D)), res((1, D)),            # wq, bq   (scale folded in)
        res((D, 2 * D)), res((1, 2 * D)),    # wkv, bkv (fused K|V)
        res((D, D)), res((1, D)),            # wo, bo
        res((D, d_ff)), res((1, d_ff)),      # w1, b1
        res((d_ff, D)), res((1, D)),         # w2, b2
        res((1, D)), res((1, D)),            # gamma1, beta1
        res((1, D)), res((1, D)),            # gamma2, beta2
    ]

    # --- VMEM budget (bf16 weights + pipelined activation blocks + headroom) ---
    weight_bytes = 2 * (4 * D * D + 2 * D * d_ff)
    act_block_bytes = 4 * (S * D + 2 * tq * D)
    scratch_bytes = 4 * (2 * S * D + 3 * tq * D + tq * S + tq * d_ff)
    vmem_limit = int(min(64 * 1024 * 1024,
                         max(32 * 1024 * 1024,
                             2 * (weight_bytes + 2 * act_block_bytes)
                             + scratch_bytes + (8 << 20))))

    # --- advisory cost estimate for the XLA scheduler --------------------
    flops = B * (8 * S * D * D + 4 * S * D * d_ff + 4 * S * S * D)
    transcendentals = B * n_heads * S * S
    bytes_accessed = weight_bytes + 4 * (2 * B * S * D)

    kernel = functools.partial(block_kernel, n_heads=n_heads)
    return pl.pallas_call(
        kernel,
        out_shape=jax.ShapeDtypeStruct((B, S, D), x.dtype),
        grid_spec=pltpu.PrefetchScalarGridSpec(
            num_scalar_prefetch=0,
            grid=(B, n_q),
            in_specs=in_specs,
            out_specs=pl.BlockSpec((1, tq, D), lambda b, qi: (b, qi, 0)),
        ),
        compiler_params=pltpu.CompilerParams(
            dimension_semantics=("parallel", "parallel"),
            vmem_limit_bytes=vmem_limit,
        ),
        cost_estimate=pl.CostEstimate(flops=flops,
                                      transcendentals=transcendentals,
                                      bytes_accessed=bytes_accessed),
    )(x, x,
      wq, bq, wkv, bkv, wo, bo,
      w1, b1, w2, b2,
      g1, be1, g2, be2)


def init_params(key, d_model, d_ff):
    # Deterministic init mimicking nn.Linear's uniform(-1/sqrt(fan_in), 1/sqrt(fan_in)).
    ks = jax.random.split(key, 12)

    def lin(kw, kb, fan_in, fan_out):
        lim = 1.0 / math.sqrt(fan_in)
        w = jax.random.uniform(kw, (fan_in, fan_out), jnp.float32, -lim, lim)
        b = jax.random.uniform(kb, (1, fan_out), jnp.float32, -lim, lim)
        return w, b

    wq, bq = lin(ks[0], ks[1], d_model, d_model)
    wk, bk = lin(ks[2], ks[3], d_model, d_model)
    wv, bv = lin(ks[4], ks[5], d_model, d_model)
    wo, bo = lin(ks[6], ks[7], d_model, d_model)
    w1, b1 = lin(ks[8], ks[9], d_model, d_ff)
    w2, b2 = lin(ks[10], ks[11], d_ff, d_model)
    ones = jnp.ones((1, d_model), jnp.float32)
    zeros = jnp.zeros((1, d_model), jnp.float32)
    return dict(wq=wq, bq=bq, wk=wk, bk=bk, wv=wv, bv=bv, wo=wo, bo=bo,
                w1=w1, b1=b1, w2=w2, b2=b2,
                gamma1=ones, beta1=zeros, gamma2=ones, beta2=zeros)


if __name__ == "__main__":
    B, S, D, H, FF = 2, 8, 32, 4, 64
    key = jax.random.PRNGKey(0)
    kx, kp = jax.random.split(key)
    x = jax.random.normal(kx, (B, S, D), jnp.float32)
    params = init_params(kp, D, FF)

    out = block_forward(x, params, n_heads=H)
    jax.block_until_ready(out)
    assert out.shape == (B, S, D)
    print("KERNEL_OK")
</pallas_src>

<mosaic_0001>
module attributes {stable_mosaic.version = 11 : i64} {
  func.func @block_kernel(%arg0: i32, %arg1: i32, %arg2: memref<1x8x32xf32, #tpu.memory_space<vmem>>, %arg3: memref<1x8x32xf32, #tpu.memory_space<vmem>>, %arg4: memref<32x32xbf16, #tpu.memory_space<vmem>>, %arg5: memref<1x32xf32, #tpu.memory_space<vmem>>, %arg6: memref<32x64xbf16, #tpu.memory_space<vmem>>, %arg7: memref<1x64xf32, #tpu.memory_space<vmem>>, %arg8: memref<32x32xbf16, #tpu.memory_space<vmem>>, %arg9: memref<1x32xf32, #tpu.memory_space<vmem>>, %arg10: memref<32x64xbf16, #tpu.memory_space<vmem>>, %arg11: memref<1x64xf32, #tpu.memory_space<vmem>>, %arg12: memref<64x32xbf16, #tpu.memory_space<vmem>>, %arg13: memref<1x32xf32, #tpu.memory_space<vmem>>, %arg14: memref<1x32xf32, #tpu.memory_space<vmem>>, %arg15: memref<1x32xf32, #tpu.memory_space<vmem>>, %arg16: memref<1x32xf32, #tpu.memory_space<vmem>>, %arg17: memref<1x32xf32, #tpu.memory_space<vmem>>, %arg18: memref<1x8x32xf32, #tpu.memory_space<vmem>>) attributes {dimension_semantics = [#tpu.dimension_semantics<parallel>, #tpu.dimension_semantics<parallel>], iteration_bounds = array<i64: 2, 1>, scalar_prefetch = 0 : i64, scratch_operands = 0 : i64, tpu.core_type = #tpu.core_type<tc>, window_params = [{transform_indices = @transform_0, window_bounds = array<i64: 1, 8, 32>}, {transform_indices = @transform_1, window_bounds = array<i64: 1, 8, 32>}, {pipeline_mode = #tpu.pipeline_mode<synchronous>, transform_indices = @transform_2, window_bounds = array<i64: 32, 32>}, {pipeline_mode = #tpu.pipeline_mode<synchronous>, transform_indices = @transform_3, window_bounds = array<i64: 1, 32>}, {pipeline_mode = #tpu.pipeline_mode<synchronous>, transform_indices = @transform_4, window_bounds = array<i64: 32, 64>}, {pipeline_mode = #tpu.pipeline_mode<synchronous>, transform_indices = @transform_5, window_bounds = array<i64: 1, 64>}, {pipeline_mode = #tpu.pipeline_mode<synchronous>, transform_indices = @transform_6, window_bounds = array<i64: 32, 32>}, {pipeline_mode = #tpu.pipeline_mode<synchronous>, transform_indices = @transform_7, window_bounds = array<i64: 1, 32>}, {pipeline_mode = #tpu.pipeline_mode<synchronous>, transform_indices = @transform_8, window_bounds = array<i64: 32, 64>}, {pipeline_mode = #tpu.pipeline_mode<synchronous>, transform_indices = @transform_9, window_bounds = array<i64: 1, 64>}, {pipeline_mode = #tpu.pipeline_mode<synchronous>, transform_indices = @transform_10, window_bounds = array<i64: 64, 32>}, {pipeline_mode = #tpu.pipeline_mode<synchronous>, transform_indices = @transform_11, window_bounds = array<i64: 1, 32>}, {pipeline_mode = #tpu.pipeline_mode<synchronous>, transform_indices = @transform_12, window_bounds = array<i64: 1, 32>}, {pipeline_mode = #tpu.pipeline_mode<synchronous>, transform_indices = @transform_13, window_bounds = array<i64: 1, 32>}, {pipeline_mode = #tpu.pipeline_mode<synchronous>, transform_indices = @transform_14, window_bounds = array<i64: 1, 32>}, {pipeline_mode = #tpu.pipeline_mode<synchronous>, transform_indices = @transform_15, window_bounds = array<i64: 1, 32>}, {transform_indices = @transform_16, window_bounds = array<i64: 1, 8, 32>}]} {
    %c0 = arith.constant 0 : index
    %c0_0 = arith.constant 0 : index
    %c0_1 = arith.constant 0 : index
    %0 = vector.load %arg2[%c0, %c0_0, %c0_1] : memref<1x8x32xf32, #tpu.memory_space<vmem>>, vector<1x8x32xf32>
    %1 = vector.shape_cast %0 : vector<1x8x32xf32> to vector<8x32xf32>
    %c0_2 = arith.constant 0 : index
    %c0_3 = arith.constant 0 : index
    %c0_4 = arith.constant 0 : index
    %2 = vector.load %arg3[%c0_2, %c0_3, %c0_4] : memref<1x8x32xf32, #tpu.memory_space<vmem>>, vector<1x8x32xf32>
    %3 = vector.shape_cast %2 : vector<1x8x32xf32> to vector<8x32xf32>
    %4 = arith.truncf %3 : vector<8x32xf32> to vector<8x32xbf16>
    %5 = arith.truncf %1 : vector<8x32xf32> to vector<8x32xbf16>
    %c0_5 = arith.constant 0 : index
    %c0_6 = arith.constant 0 : index
    %6 = vector.load %arg4[%c0_5, %c0_6] : memref<32x32xbf16, #tpu.memory_space<vmem>>, vector<32x32xbf16>
    %cst = arith.constant dense<0.000000e+00> : vector<8x32xf32>
    %7 = tpu.matmul %4, %6, %cst {dimension_numbers = #tpu.dot_dimension_numbers<[1], [0], [0], [1], [0, 0, 1, 1], [], []>} : vector<8x32xbf16>, vector<32x32xbf16>, vector<8x32xf32> -> vector<8x32xf32>
    %c0_7 = arith.constant 0 : index
    %c0_8 = arith.constant 0 : index
    %8 = vector.load %arg5[%c0_7, %c0_8] : memref<1x32xf32, #tpu.memory_space<vmem>>, vector<1x32xf32>
    %9 = vector.broadcast %8 : vector<1x32xf32> to vector<8x32xf32>
    %10 = arith.addf %7, %9 : vector<8x32xf32>
    %c0_9 = arith.constant 0 : index
    %c0_10 = arith.constant 0 : index
    %11 = vector.load %arg6[%c0_9, %c0_10] : memref<32x64xbf16, #tpu.memory_space<vmem>>, vector<32x64xbf16>
    %cst_11 = arith.constant dense<0.000000e+00> : vector<8x64xf32>
    %12 = tpu.matmul %5, %11, %cst_11 {dimension_numbers = #tpu.dot_dimension_numbers<[1], [0], [0], [1], [0, 0, 1, 1], [], []>} : vector<8x32xbf16>, vector<32x64xbf16>, vector<8x64xf32> -> vector<8x64xf32>
    %c0_12 = arith.constant 0 : index
    %c0_13 = arith.constant 0 : index
    %13 = vector.load %arg7[%c0_12, %c0_13] : memref<1x64xf32, #tpu.memory_space<vmem>>, vector<1x64xf32>
    %14 = vector.broadcast %13 : vector<1x64xf32> to vector<8x64xf32>
    %15 = arith.addf %12, %14 : vector<8x64xf32>
    %cst_14 = arith.constant 0.000000e+00 : f32
    %16 = vector.broadcast %cst_14 : f32 to vector<8x32xf32>
    %17 = vector.extract_strided_slice %10 {offsets = [0, 0], sizes = [8, 8], strides = [1, 1]} : vector<8x32xf32> to vector<8x8xf32>
    %18 = arith.truncf %17 : vector<8x8xf32> to vector<8x8xbf16>
    %19 = vector.extract_strided_slice %15 {offsets = [0, 0], sizes = [8, 8], strides = [1, 1]} : vector<8x64xf32> to vector<8x8xf32>
    %20 = arith.truncf %19 : vector<8x8xf32> to vector<8x8xbf16>
    %21 = vector.extract_strided_slice %15 {offsets = [0, 32], sizes = [8, 8], strides = [1, 1]} : vector<8x64xf32> to vector<8x8xf32>
    %22 = arith.truncf %21 : vector<8x8xf32> to vector<8x8xbf16>
    %cst_15 = arith.constant dense<0.000000e+00> : vector<8x8xf32>
    %23 = tpu.matmul %18, %20, %cst_15 {dimension_numbers = #tpu.dot_dimension_numbers<[1], [1], [0], [0], [0, 0, 1, 0], [], []>} : vector<8x8xbf16>, vector<8x8xbf16>, vector<8x8xf32> -> vector<8x8xf32>
    %cst_16 = arith.constant dense<0xFF800000> : vector<8xf32>
    %24 = vector.multi_reduction <maximumf>, %23, %cst_16 [1] : vector<8x8xf32> to vector<8xf32>
    %25 = vector.shape_cast %24 : vector<8xf32> to vector<8x1xf32>
    %26 = vector.broadcast %25 : vector<8x1xf32> to vector<8x8xf32>
    %27 = arith.subf %23, %26 : vector<8x8xf32>
    %28 = math.exp %27 : vector<8x8xf32>
    %cst_17 = arith.constant dense<0.000000e+00> : vector<8xf32>
    %29 = vector.multi_reduction <add>, %28, %cst_17 [1] : vector<8x8xf32> to vector<8xf32>
    %30 = vector.shape_cast %29 : vector<8xf32> to vector<8x1xf32>
    %31 = tpu.reciprocal %30 {approx = true} : vector<8x1xf32> -> vector<8x1xf32>
    %32 = vector.broadcast %31 : vector<8x1xf32> to vector<8x8xf32>
    %33 = arith.mulf %28, %32 : vector<8x8xf32>
    %34 = arith.truncf %33 : vector<8x8xf32> to vector<8x8xbf16>
    %cst_18 = arith.constant dense<0.000000e+00> : vector<8x8xf32>
    %35 = tpu.matmul %34, %22, %cst_18 {dimension_numbers = #tpu.dot_dimension_numbers<[1], [0], [0], [1], [0, 0, 1, 1], [], []>} : vector<8x8xbf16>, vector<8x8xbf16>, vector<8x8xf32> -> vector<8x8xf32>
    %36 = arith.truncf %35 : vector<8x8xf32> to vector<8x8xbf16>
    %c0_19 = arith.constant 0 : index
    %c0_20 = arith.constant 0 : index
    %37 = vector.load %arg8[%c0_19, %c0_20] : memref<32x32xbf16, #tpu.memory_space<vmem>>, vector<8x32xbf16>
    %cst_21 = arith.constant dense<0.000000e+00> : vector<8x32xf32>
    %38 = tpu.matmul %36, %37, %cst_21 {dimension_numbers = #tpu.dot_dimension_numbers<[1], [0], [0], [1], [0, 0, 1, 1], [], []>} : vector<8x8xbf16>, vector<8x32xbf16>, vector<8x32xf32> -> vector<8x32xf32>
    %39 = arith.addf %16, %38 : vector<8x32xf32>
    %40 = vector.extract_strided_slice %10 {offsets = [0, 8], sizes = [8, 8], strides = [1, 1]} : vector<8x32xf32> to vector<8x8xf32>
    %41 = arith.truncf %40 : vector<8x8xf32> to vector<8x8xbf16>
    %42 = vector.extract_strided_slice %15 {offsets = [0, 8], sizes = [8, 8], strides = [1, 1]} : vector<8x64xf32> to vector<8x8xf32>
    %43 = arith.truncf %42 : vector<8x8xf32> to vector<8x8xbf16>
    %44 = vector.extract_strided_slice %15 {offsets = [0, 40], sizes = [8, 8], strides = [1, 1]} : vector<8x64xf32> to vector<8x8xf32>
    %45 = arith.truncf %44 : vector<8x8xf32> to vector<8x8xbf16>
    %cst_22 = arith.constant dense<0.000000e+00> : vector<8x8xf32>
    %46 = tpu.matmul %41, %43, %cst_22 {dimension_numbers = #tpu.dot_dimension_numbers<[1], [1], [0], [0], [0, 0, 1, 0], [], []>} : vector<8x8xbf16>, vector<8x8xbf16>, vector<8x8xf32> -> vector<8x8xf32>
    %cst_23 = arith.constant dense<0xFF800000> : vector<8xf32>
    %47 = vector.multi_reduction <maximumf>, %46, %cst_23 [1] : vector<8x8xf32> to vector<8xf32>
    %48 = vector.shape_cast %47 : vector<8xf32> to vector<8x1xf32>
    %49 = vector.broadcast %48 : vector<8x1xf32> to vector<8x8xf32>
    %50 = arith.subf %46, %49 : vector<8x8xf32>
    %51 = math.exp %50 : vector<8x8xf32>
    %cst_24 = arith.constant dense<0.000000e+00> : vector<8xf32>
    %52 = vector.multi_reduction <add>, %51, %cst_24 [1] : vector<8x8xf32> to vector<8xf32>
    %53 = vector.shape_cast %52 : vector<8xf32> to vector<8x1xf32>
    %54 = tpu.reciprocal %53 {approx = true} : vector<8x1xf32> -> vector<8x1xf32>
    %55 = vector.broadcast %54 : vector<8x1xf32> to vector<8x8xf32>
    %56 = arith.mulf %51, %55 : vector<8x8xf32>
    %57 = arith.truncf %56 : vector<8x8xf32> to vector<8x8xbf16>
    %cst_25 = arith.constant dense<0.000000e+00> : vector<8x8xf32>
    %58 = tpu.matmul %57, %45, %cst_25 {dimension_numbers = #tpu.dot_dimension_numbers<[1], [0], [0], [1], [0, 0, 1, 1], [], []>} : vector<8x8xbf16>, vector<8x8xbf16>, vector<8x8xf32> -> vector<8x8xf32>
    %59 = arith.truncf %58 : vector<8x8xf32> to vector<8x8xbf16>
    %c8 = arith.constant 8 : index
    %c0_26 = arith.constant 0 : index
    %60 = vector.load %arg8[%c8, %c0_26] : memref<32x32xbf16, #tpu.memory_space<vmem>>, vector<8x32xbf16>
    %cst_27 = arith.constant dense<0.000000e+00> : vector<8x32xf32>
    %61 = tpu.matmul %59, %60, %cst_27 {dimension_numbers = #tpu.dot_dimension_numbers<[1], [0], [0], [1], [0, 0, 1, 1], [], []>} : vector<8x8xbf16>, vector<8x32xbf16>, vector<8x32xf32> -> vector<8x32xf32>
    %62 = arith.addf %39, %61 : vector<8x32xf32>
    %63 = vector.extract_strided_slice %10 {offsets = [0, 16], sizes = [8, 8], strides = [1, 1]} : vector<8x32xf32> to vector<8x8xf32>
    %64 = arith.truncf %63 : vector<8x8xf32> to vector<8x8xbf16>
    %65 = vector.extract_strided_slice %15 {offsets = [0, 16], sizes = [8, 8], strides = [1, 1]} : vector<8x64xf32> to vector<8x8xf32>
    %66 = arith.truncf %65 : vector<8x8xf32> to vector<8x8xbf16>
    %67 = vector.extract_strided_slice %15 {offsets = [0, 48], sizes = [8, 8], strides = [1, 1]} : vector<8x64xf32> to vector<8x8xf32>
    %68 = arith.truncf %67 : vector<8x8xf32> to vector<8x8xbf16>
    %cst_28 = arith.constant dense<0.000000e+00> : vector<8x8xf32>
    %69 = tpu.matmul %64, %66, %cst_28 {dimension_numbers = #tpu.dot_dimension_numbers<[1], [1], [0], [0], [0, 0, 1, 0], [], []>} : vector<8x8xbf16>, vector<8x8xbf16>, vector<8x8xf32> -> vector<8x8xf32>
    %cst_29 = arith.constant dense<0xFF800000> : vector<8xf32>
    %70 = vector.multi_reduction <maximumf>, %69, %cst_29 [1] : vector<8x8xf32> to vector<8xf32>
    %71 = vector.shape_cast %70 : vector<8xf32> to vector<8x1xf32>
    %72 = vector.broadcast %71 : vector<8x1xf32> to vector<8x8xf32>
    %73 = arith.subf %69, %72 : vector<8x8xf32>
    %74 = math.exp %73 : vector<8x8xf32>
    %cst_30 = arith.constant dense<0.000000e+00> : vector<8xf32>
    %75 = vector.multi_reduction <add>, %74, %cst_30 [1] : vector<8x8xf32> to vector<8xf32>
    %76 = vector.shape_cast %75 : vector<8xf32> to vector<8x1xf32>
    %77 = tpu.reciprocal %76 {approx = true} : vector<8x1xf32> -> vector<8x1xf32>
    %78 = vector.broadcast %77 : vector<8x1xf32> to vector<8x8xf32>
    %79 = arith.mulf %74, %78 : vector<8x8xf32>
    %80 = arith.truncf %79 : vector<8x8xf32> to vector<8x8xbf16>
    %cst_31 = arith.constant dense<0.000000e+00> : vector<8x8xf32>
    %81 = tpu.matmul %80, %68, %cst_31 {dimension_numbers = #tpu.dot_dimension_numbers<[1], [0], [0], [1], [0, 0, 1, 1], [], []>} : vector<8x8xbf16>, vector<8x8xbf16>, vector<8x8xf32> -> vector<8x8xf32>
    %82 = arith.truncf %81 : vector<8x8xf32> to vector<8x8xbf16>
    %c16 = arith.constant 16 : index
    %c0_32 = arith.constant 0 : index
    %83 = vector.load %arg8[%c16, %c0_32] : memref<32x32xbf16, #tpu.memory_space<vmem>>, vector<8x32xbf16>
    %cst_33 = arith.constant dense<0.000000e+00> : vector<8x32xf32>
    %84 = tpu.matmul %82, %83, %cst_33 {dimension_numbers = #tpu.dot_dimension_numbers<[1], [0], [0], [1], [0, 0, 1, 1], [], []>} : vector<8x8xbf16>, vector<8x32xbf16>, vector<8x32xf32> -> vector<8x32xf32>
    %85 = arith.addf %62, %84 : vector<8x32xf32>
    %86 = vector.extract_strided_slice %10 {offsets = [0, 24], sizes = [8, 8], strides = [1, 1]} : vector<8x32xf32> to vector<8x8xf32>
    %87 = arith.truncf %86 : vector<8x8xf32> to vector<8x8xbf16>
    %88 = vector.extract_strided_slice %15 {offsets = [0, 24], sizes = [8, 8], strides = [1, 1]} : vector<8x64xf32> to vector<8x8xf32>
    %89 = arith.truncf %88 : vector<8x8xf32> to vector<8x8xbf16>
    %90 = vector.extract_strided_slice %15 {offsets = [0, 56], sizes = [8, 8], strides = [1, 1]} : vector<8x64xf32> to vector<8x8xf32>
    %91 = arith.truncf %90 : vector<8x8xf32> to vector<8x8xbf16>
    %cst_34 = arith.constant dense<0.000000e+00> : vector<8x8xf32>
    %92 = tpu.matmul %87, %89, %cst_34 {dimension_numbers = #tpu.dot_dimension_numbers<[1], [1], [0], [0], [0, 0, 1, 0], [], []>} : vector<8x8xbf16>, vector<8x8xbf16>, vector<8x8xf32> -> vector<8x8xf32>
    %cst_35 = arith.constant dense<0xFF800000> : vector<8xf32>
    %93 = vector.multi_reduction <maximumf>, %92, %cst_35 [1] : vector<8x8xf32> to vector<8xf32>
    %94 = vector.shape_cast %93 : vector<8xf32> to vector<8x1xf32>
    %95 = vector.broadcast %94 : vector<8x1xf32> to vector<8x8xf32>
    %96 = arith.subf %92, %95 : vector<8x8xf32>
    %97 = math.exp %96 : vector<8x8xf32>
    %cst_36 = arith.constant dense<0.000000e+00> : vector<8xf32>
    %98 = vector.multi_reduction <add>, %97, %cst_36 [1] : vector<8x8xf32> to vector<8xf32>
    %99 = vector.shape_cast %98 : vector<8xf32> to vector<8x1xf32>
    %100 = tpu.reciprocal %99 {approx = true} : vector<8x1xf32> -> vector<8x1xf32>
    %101 = vector.broadcast %100 : vector<8x1xf32> to vector<8x8xf32>
    %102 = arith.mulf %97, %101 : vector<8x8xf32>
    %103 = arith.truncf %102 : vector<8x8xf32> to vector<8x8xbf16>
    %cst_37 = arith.constant dense<0.000000e+00> : vector<8x8xf32>
    %104 = tpu.matmul %103, %91, %cst_37 {dimension_numbers = #tpu.dot_dimension_numbers<[1], [0], [0], [1], [0, 0, 1, 1], [], []>} : vector<8x8xbf16>, vector<8x8xbf16>, vector<8x8xf32> -> vector<8x8xf32>
    %105 = arith.truncf %104 : vector<8x8xf32> to vector<8x8xbf16>
    %c24 = arith.constant 24 : index
    %c0_38 = arith.constant 0 : index
    %106 = vector.load %arg8[%c24, %c0_38] : memref<32x32xbf16, #tpu.memory_space<vmem>>, vector<8x32xbf16>
    %cst_39 = arith.constant dense<0.000000e+00> : vector<8x32xf32>
    %107 = tpu.matmul %105, %106, %cst_39 {dimension_numbers = #tpu.dot_dimension_numbers<[1], [0], [0], [1], [0, 0, 1, 1], [], []>} : vector<8x8xbf16>, vector<8x32xbf16>, vector<8x32xf32> -> vector<8x32xf32>
    %108 = arith.addf %85, %107 : vector<8x32xf32>
    %c0_40 = arith.constant 0 : index
    %c0_41 = arith.constant 0 : index
    %109 = vector.load %arg9[%c0_40, %c0_41] : memref<1x32xf32, #tpu.memory_space<vmem>>, vector<1x32xf32>
    %110 = vector.broadcast %109 : vector<1x32xf32> to vector<8x32xf32>
    %111 = arith.addf %108, %110 : vector<8x32xf32>
    %112 = arith.addf %3, %111 : vector<8x32xf32>
    %c0_42 = arith.constant 0 : index
    %c0_43 = arith.constant 0 : index
    %113 = vector.load %arg14[%c0_42, %c0_43] : memref<1x32xf32, #tpu.memory_space<vmem>>, vector<1x32xf32>
    %c0_44 = arith.constant 0 : index
    %c0_45 = arith.constant 0 : index
    %114 = vector.load %arg15[%c0_44, %c0_45] : memref<1x32xf32, #tpu.memory_space<vmem>>, vector<1x32xf32>
    %cst_46 = arith.constant dense<0.000000e+00> : vector<8xf32>
    %115 = vector.multi_reduction <add>, %112, %cst_46 [1] : vector<8x32xf32> to vector<8xf32>
    %116 = vector.shape_cast %115 : vector<8xf32> to vector<8x1xf32>
    %cst_47 = arith.constant 3.200000e+01 : f32
    %117 = vector.broadcast %cst_47 : f32 to vector<8x1xf32>
    %118 = arith.divf %116, %117 : vector<8x1xf32>
    %119 = vector.broadcast %118 : vector<8x1xf32> to vector<8x32xf32>
    %120 = arith.subf %112, %119 : vector<8x32xf32>
    %121 = vector.broadcast %118 : vector<8x1xf32> to vector<8x32xf32>
    %122 = arith.subf %112, %121 : vector<8x32xf32>
    %123 = arith.mulf %120, %122 : vector<8x32xf32>
    %cst_48 = arith.constant dense<0.000000e+00> : vector<8xf32>
    %124 = vector.multi_reduction <add>, %123, %cst_48 [1] : vector<8x32xf32> to vector<8xf32>
    %125 = vector.shape_cast %124 : vector<8xf32> to vector<8x1xf32>
    %cst_49 = arith.constant 3.200000e+01 : f32
    %126 = vector.broadcast %cst_49 : f32 to vector<8x1xf32>
    %127 = arith.divf %125, %126 : vector<8x1xf32>
    %128 = vector.broadcast %118 : vector<8x1xf32> to vector<8x32xf32>
    %129 = arith.subf %112, %128 : vector<8x32xf32>
    %cst_50 = arith.constant 9.99999974E-6 : f32
    %130 = vector.broadcast %cst_50 : f32 to vector<8x1xf32>
    %131 = arith.addf %127, %130 : vector<8x1xf32>
    %132 = math.rsqrt %131 : vector<8x1xf32>
    %133 = vector.broadcast %132 : vector<8x1xf32> to vector<8x32xf32>
    %134 = arith.mulf %129, %133 : vector<8x32xf32>
    %135 = vector.broadcast %113 : vector<1x32xf32> to vector<8x32xf32>
    %136 = arith.mulf %134, %135 : vector<8x32xf32>
    %137 = vector.broadcast %114 : vector<1x32xf32> to vector<8x32xf32>
    %138 = arith.addf %136, %137 : vector<8x32xf32>
    %139 = arith.truncf %138 : vector<8x32xf32> to vector<8x32xbf16>
    %c0_51 = arith.constant 0 : index
    %c0_52 = arith.constant 0 : index
    %140 = vector.load %arg10[%c0_51, %c0_52] : memref<32x64xbf16, #tpu.memory_space<vmem>>, vector<32x64xbf16>
    %cst_53 = arith.constant dense<0.000000e+00> : vector<8x64xf32>
    %141 = tpu.matmul %139, %140, %cst_53 {dimension_numbers = #tpu.dot_dimension_numbers<[1], [0], [0], [1], [0, 0, 1, 1], [], []>} : vector<8x32xbf16>, vector<32x64xbf16>, vector<8x64xf32> -> vector<8x64xf32>
    %c0_54 = arith.constant 0 : index
    %c0_55 = arith.constant 0 : index
    %142 = vector.load %arg11[%c0_54, %c0_55] : memref<1x64xf32, #tpu.memory_space<vmem>>, vector<1x64xf32>
    %143 = vector.broadcast %142 : vector<1x64xf32> to vector<8x64xf32>
    %144 = arith.addf %141, %143 : vector<8x64xf32>
    %cst_56 = arith.constant 0.000000e+00 : f32
    %145 = vector.broadcast %cst_56 : f32 to vector<8x64xf32>
    %146 = arith.maximumf %144, %145 : vector<8x64xf32>
    %147 = arith.truncf %146 : vector<8x64xf32> to vector<8x64xbf16>
    %c0_57 = arith.constant 0 : index
    %c0_58 = arith.constant 0 : index
    %148 = vector.load %arg12[%c0_57, %c0_58] : memref<64x32xbf16, #tpu.memory_space<vmem>>, vector<64x32xbf16>
    %cst_59 = arith.constant dense<0.000000e+00> : vector<8x32xf32>
    %149 = tpu.matmul %147, %148, %cst_59 {dimension_numbers = #tpu.dot_dimension_numbers<[1], [0], [0], [1], [0, 0, 1, 1], [], []>} : vector<8x64xbf16>, vector<64x32xbf16>, vector<8x32xf32> -> vector<8x32xf32>
    %c0_60 = arith.constant 0 : index
    %c0_61 = arith.constant 0 : index
    %150 = vector.load %arg13[%c0_60, %c0_61] : memref<1x32xf32, #tpu.memory_space<vmem>>, vector<1x32xf32>
    %151 = vector.broadcast %150 : vector<1x32xf32> to vector<8x32xf32>
    %152 = arith.addf %149, %151 : vector<8x32xf32>
    %153 = arith.addf %138, %152 : vector<8x32xf32>
    %c0_62 = arith.constant 0 : index
    %c0_63 = arith.constant 0 : index
    %154 = vector.load %arg16[%c0_62, %c0_63] : memref<1x32xf32, #tpu.memory_space<vmem>>, vector<1x32xf32>
    %c0_64 = arith.constant 0 : index
    %c0_65 = arith.constant 0 : index
    %155 = vector.load %arg17[%c0_64, %c0_65] : memref<1x32xf32, #tpu.memory_space<vmem>>, vector<1x32xf32>
    %cst_66 = arith.constant dense<0.000000e+00> : vector<8xf32>
    %156 = vector.multi_reduction <add>, %153, %cst_66 [1] : vector<8x32xf32> to vector<8xf32>
    %157 = vector.shape_cast %156 : vector<8xf32> to vector<8x1xf32>
    %cst_67 = arith.constant 3.200000e+01 : f32
    %158 = vector.broadcast %cst_67 : f32 to vector<8x1xf32>
    %159 = arith.divf %157, %158 : vector<8x1xf32>
    %160 = vector.broadcast %159 : vector<8x1xf32> to vector<8x32xf32>
    %161 = arith.subf %153, %160 : vector<8x32xf32>
    %162 = vector.broadcast %159 : vector<8x1xf32> to vector<8x32xf32>
    %163 = arith.subf %153, %162 : vector<8x32xf32>
    %164 = arith.mulf %161, %163 : vector<8x32xf32>
    %cst_68 = arith.constant dense<0.000000e+00> : vector<8xf32>
    %165 = vector.multi_reduction <add>, %164, %cst_68 [1] : vector<8x32xf32> to vector<8xf32>
    %166 = vector.shape_cast %165 : vector<8xf32> to vector<8x1xf32>
    %cst_69 = arith.constant 3.200000e+01 : f32
    %167 = vector.broadcast %cst_69 : f32 to vector<8x1xf32>
    %168 = arith.divf %166, %167 : vector<8x1xf32>
    %169 = vector.broadcast %159 : vector<8x1xf32> to vector<8x32xf32>
    %170 = arith.subf %153, %169 : vector<8x32xf32>
    %cst_70 = arith.constant 9.99999974E-6 : f32
    %171 = vector.broadcast %cst_70 : f32 to vector<8x1xf32>
    %172 = arith.addf %168, %171 : vector<8x1xf32>
    %173 = math.rsqrt %172 : vector<8x1xf32>
    %174 = vector.broadcast %173 : vector<8x1xf32> to vector<8x32xf32>
    %175 = arith.mulf %170, %174 : vector<8x32xf32>
    %176 = vector.broadcast %154 : vector<1x32xf32> to vector<8x32xf32>
    %177 = arith.mulf %175, %176 : vector<8x32xf32>
    %178 = vector.broadcast %155 : vector<1x32xf32> to vector<8x32xf32>
    %179 = arith.addf %177, %178 : vector<8x32xf32>
    %c0_71 = arith.constant 0 : index
    %c0_72 = arith.constant 0 : index
    %c0_73 = arith.constant 0 : index
    %180 = vector.load %arg18[%c0_71, %c0_72, %c0_73] : memref<1x8x32xf32, #tpu.memory_space<vmem>>, vector<1x8x32xf32>
    %181 = vector.shape_cast %180 : vector<1x8x32xf32> to vector<8x32xf32>
    %182 = vector.shape_cast %179 : vector<8x32xf32> to vector<1x8x32xf32>
    tpu.vector_store %arg18[%c0_71, %c0_72, %c0_73], %182 {strides = array<i32>} : memref<1x8x32xf32, #tpu.memory_space<vmem>>, vector<1x8x32xf32>,
    return
  }
  func.func @transform_0(%arg0: i32, %arg1: i32) -> (i32, i32, i32) {
    %c0_i32 = arith.constant 0 : i32
    %c0_i32_0 = arith.constant 0 : i32
    %c0_i32_1 = arith.constant 0 : i32
    return %arg0, %c0_i32, %c0_i32_0 : i32, i32, i32
  }
  func.func @transform_1(%arg0: i32, %arg1: i32) -> (i32, i32, i32) {
    %c0_i32 = arith.constant 0 : i32
    %c0_i32_0 = arith.constant 0 : i32
    return %arg0, %arg1, %c0_i32 : i32, i32, i32
  }
  func.func @transform_2(%arg0: i32, %arg1: i32) -> (i32, i32) {
    %c0_i32 = arith.constant 0 : i32
    %c0_i32_0 = arith.constant 0 : i32
    %c0_i32_1 = arith.constant 0 : i32
    return %c0_i32, %c0_i32_0 : i32, i32
  }
  func.func @transform_3(%arg0: i32, %arg1: i32) -> (i32, i32) {
    %c0_i32 = arith.constant 0 : i32
    %c0_i32_0 = arith.constant 0 : i32
    %c0_i32_1 = arith.constant 0 : i32
    return %c0_i32, %c0_i32_0 : i32, i32
  }
  func.func @transform_4(%arg0: i32, %arg1: i32) -> (i32, i32) {
    %c0_i32 = arith.constant 0 : i32
    %c0_i32_0 = arith.constant 0 : i32
    %c0_i32_1 = arith.constant 0 : i32
    return %c0_i32, %c0_i32_0 : i32, i32
  }
  func.func @transform_5(%arg0: i32, %arg1: i32) -> (i32, i32) {
    %c0_i32 = arith.constant 0 : i32
    %c0_i32_0 = arith.constant 0 : i32
    %c0_i32_1 = arith.constant 0 : i32
    return %c0_i32, %c0_i32_0 : i32, i32
  }
  func.func @transform_6(%arg0: i32, %arg1: i32) -> (i32, i32) {
    %c0_i32 = arith.constant 0 : i32
    %c0_i32_0 = arith.constant 0 : i32
    %c0_i32_1 = arith.constant 0 : i32
    return %c0_i32, %c0_i32_0 : i32, i32
  }
  func.func @transform_7(%arg0: i32, %arg1: i32) -> (i32, i32) {
    %c0_i32 = arith.constant 0 : i32
    %c0_i32_0 = arith.constant 0 : i32
    %c0_i32_1 = arith.constant 0 : i32
    return %c0_i32, %c0_i32_0 : i32, i32
  }
  func.func @transform_8(%arg0: i32, %arg1: i32) -> (i32, i32) {
    %c0_i32 = arith.constant 0 : i32
    %c0_i32_0 = arith.constant 0 : i32
    %c0_i32_1 = arith.constant 0 : i32
    return %c0_i32, %c0_i32_0 : i32, i32
  }
  func.func @transform_9(%arg0: i32, %arg1: i32) -> (i32, i32) {
    %c0_i32 = arith.constant 0 : i32
    %c0_i32_0 = arith.constant 0 : i32
    %c0_i32_1 = arith.constant 0 : i32
    return %c0_i32, %c0_i32_0 : i32, i32
  }
  func.func @transform_10(%arg0: i32, %arg1: i32) -> (i32, i32) {
    %c0_i32 = arith.constant 0 : i32
    %c0_i32_0 = arith.constant 0 : i32
    %c0_i32_1 = arith.constant 0 : i32
    return %c0_i32, %c0_i32_0 : i32, i32
  }
  func.func @transform_11(%arg0: i32, %arg1: i32) -> (i32, i32) {
    %c0_i32 = arith.constant 0 : i32
    %c0_i32_0 = arith.constant 0 : i32
    %c0_i32_1 = arith.constant 0 : i32
    return %c0_i32, %c0_i32_0 : i32, i32
  }
  func.func @transform_12(%arg0: i32, %arg1: i32) -> (i32, i32) {
    %c0_i32 = arith.constant 0 : i32
    %c0_i32_0 = arith.constant 0 : i32
    %c0_i32_1 = arith.constant 0 : i32
    return %c0_i32, %c0_i32_0 : i32, i32
  }
  func.func @transform_13(%arg0: i32, %arg1: i32) -> (i32, i32) {
    %c0_i32 = arith.constant 0 : i32
    %c0_i32_0 = arith.constant 0 : i32
    %c0_i32_1 = arith.constant 0 : i32
    return %c0_i32, %c0_i32_0 : i32, i32
  }
  func.func @transform_14(%arg0: i32, %arg1: i32) -> (i32, i32) {
    %c0_i32 = arith.constant 0 : i32
    %c0_i32_0 = arith.constant 0 : i32
    %c0_i32_1 = arith.constant 0 : i32
    return %c0_i32, %c0_i32_0 : i32, i32
  }
  func.func @transform_15(%arg0: i32, %arg1: i32) -> (i32, i32) {
    %c0_i32 = arith.constant 0 : i32
    %c0_i32_0 = arith.constant 0 : i32
    %c0_i32_1 = arith.constant 0 : i32
    return %c0_i32, %c0_i32_0 : i32, i32
  }
  func.func @transform_16(%arg0: i32, %arg1: i32) -> (i32, i32, i32) {
    %c0_i32 = arith.constant 0 : i32
    %c0_i32_0 = arith.constant 0 : i32
    return %arg0, %arg1, %c0_i32 : i32, i32, i32
  }
}

</mosaic_0001>

<bundles_post_ra>
// kernel: tpu_custom_call.1
= control target key start
LH: loop header
LB: loop body
LE: loop exit
PB: predicated region body
PF: predicated region fallthrough
CT: control target
= control target key end

     0   :  { %s2032_s0 = inlined_call_operand.vmem [shape: f32[2,8,32], index: 0, kind: input, shape index: {}]   ;;  %s2033_s1 = inlined_call_operand.vmem [shape: f32[2,8,32], index: 1, kind: input, shape index: {}]   ;;  %s2034_s2 = inlined_call_operand.vmem [shape: bf16[32,32], index: 2, kind: input, shape index: {}]   ;;  %s2035_s3 = inlined_call_operand.vmem [shape: f32[1,32], index: 3, kind: input, shape index: {}]   ;;  %s2036_s4 = inlined_call_operand.hbm [shape: bf16[32,64], index: 4, kind: input, shape index: {}]   ;;  %s2037_s5 = inlined_call_operand.vmem [shape: f32[1,64], index: 5, kind: input, shape index: {}]   ;;  %s2038_s6 = inlined_call_operand.hbm [shape: bf16[32,32], index: 6, kind: input, shape index: {}]   ;;  %s2039_s7 = inlined_call_operand.vmem [shape: f32[1,32], index: 7, kind: input, shape index: {}]   ;;  %s2040_s8 = inlined_call_operand.hbm [shape: bf16[32,64], index: 8, kind: input, shape index: {}]   ;;  %s2041_s9 = inlined_call_operand.vmem [shape: f32[1,64], index: 9, kind: input, shape index: {}]   ;;  %s2042_s10 = inlined_call_operand.vmem [shape: bf16[64,32], index: 10, kind: input, shape index: {}]   ;;  %s2043_s11 = inlined_call_operand.vmem [shape: f32[1,32], index: 11, kind: input, shape index: {}]   ;;  %s2044_s12 = inlined_call_operand.vmem [shape: f32[1,32], index: 12, kind: input, shape index: {}]   ;;  %s2045_s13 = inlined_call_operand.vmem [shape: f32[1,32], index: 13, kind: input, shape index: {}]   ;;  %s2046_s14 = inlined_call_operand.vmem [shape: f32[1,32], index: 14, kind: input, shape index: {}]   ;;  %s2047_s15 = inlined_call_operand.vmem [shape: f32[1,32], index: 15, kind: input, shape index: {}]   ;;  %s2048_s16 = inlined_call_operand.hbm [shape: f32[2,8,32], index: 16, kind: output, shape index: {}]  }
   0x1   :  { %2059 = sst [smem:[#allocation20_spill]] %s2032_s0 }
   0x2   :  { %2060 = sst [smem:[#allocation21_spill]] %s2038_s6 }
   0x3   :  { %2061 = sst [smem:[#allocation22_spill]] %s2046_s14 }
   0x4   :  { %2062 = sst [smem:[#allocation23_spill]] %s2047_s15 }
   0x5   :  { %2063 = sst [smem:[#allocation24_spill]] %s2048_s16 }
   0x6   :  { %21 = vsyncpa [#allocation3], 0 }
   0x7   :  { %22 = vsyncpa [#allocation6], 0 }
   0x8   :  { %23 = vsyncpa [#allocation4], 0 }
   0x9   :  { %25 = vsyncpa [#allocation4 + $0x1], 0  ;;  %s1788_s21 = smov 0   ;;  %s1790_s22 = smov 0  }
   0xa   :  { %s1792_s23 = smov 0   ;;  %s1794_s24 = smov 0  }
   0xb   :  { %s1796_s25 = smov 0   ;;  %s1798_s26 = smov 0  }
   0xc LB: > { %2064 = sst [smem:[#allocation12_spill]] %s1668_s21  ;;  %s1301_s27 = sadd.s32 4294967295, %s1688_s26   ;;  %s1688_s26 = sphi %s1798_s26, %s31_s26   ;;  %s1684_s25 = sphi %s1796_s25, %s2090_s25   ;;  %s1680_s24 = sphi %s1794_s24, %s2089_s24   ;;  %s1676_s23 = sphi %s1792_s23, %s2088_s23   ;;  %s1672_s22 = sphi %s1790_s22, %s2092_s22   ;;  %s1668_s21 = sphi %s1788_s21, %s2091_s21  }
   0xd   : > { %2065 = sst [smem:[#allocation13_spill]] %s1676_s23  ;;  %s1302_s28 = sadd.s32 4294967294, %s1688_s26  }
   0xe   : > { %2066 = sst [smem:[#allocation14_spill]] %s1684_s25  ;;  %s43_s29 = sadd.s32 1, %s1684_s25 }
   0xf   : > { %2067 = sst [smem:[#allocation15_spill]] %s1688_s26  ;;  %s400_s30 = sadd.s32 1, %s1676_s23 }
  0x10   : > { %p45_p0 = scmp.ge.s32.totalorder %s43_s29, 2  ;;  %p410_p1 = scmp.ne.s32.totalorder %s1676_s23, %s1672_s22 }
  0x11   : > { %p411_p2 = scmp.eq.s32.totalorder %s1301_s27, 1  ;;  %p416_p3 = scmp.ne.s32.totalorder %s1672_s22, %s1668_s21 }
  0x12   : > { %s2094_s29 = smov (%p45_p0, %s43_s29), 0  ;;  %p417_p5 = scmp.eq.s32.totalorder %s1302_s28, 1 }
  0x13   : > { %2068 = sst [smem:[#allocation16_spill]] %s2094_s29  ;;  %p1828_p4 = por %p411_p2, %p410_p1 }
  0x14   : > { %s395_s17 = ssub.s32 %s1684_s25, %s2094_s29  ;;  %p1303_p6 = scmp.ge.s32.totalorder %s1688_s26, 1 }
  0x15   : > { %s2069_s0 = scalar_select %p1828_p4, 1, 0 }
  0x16   : > { %p398_p7 = scmp.eq.s32.totalorder %s395_s17, 0  ;;  %p1835_p8 = por %p417_p5, %p416_p3 }
  0x17   : > { %2070 = sst [smem:[#allocation17_spill]] %s2069_s0  ;;  %p424_p9 = scmp.lt.s32.totalorder %s1688_s26, 3 }
  0x18   : > { %s2071_s18 = scalar_select %p1835_p8, 1, 0 }
  0x19   : > { %s1841_s19 = scalar_select %p398_p7, %s1676_s23, %s400_s30  }
  0x1a   : > { %2072 = sst [smem:[#allocation18_spill]] %s2071_s18  ;;  %p1843_p10 = pnand %p1303_p6, %p424_p9 }
  0x1b   : > { %2073 = sst [smem:[#allocation19_spill]] %s1841_s19  ;;  %p1847_p11 = scmp.eq.s32.totalorder %s1301_s27, 0 }
  0x1c   : > { %p1399_p12 = pneg %p1843_p10  ;;  %s2076_s6 = sld [smem:[#allocation21_spill]] }
  0x1d   : > { %s1690_s25 = smov [#allocation5]   ;;  %s1691_s19 = smov 64  }
  0x1e   : > { %p1858_p13 = pnand %p1847_p11, %p1399_p12  ;;  %s460_s27 = sshll.u32 %s1690_s25, 4  ;;  %s461_s27 = int_to_ptr.vmem [resolvable:$true] %s460_s27 }
  0x1f   : > { %s1692_s23 = smov 4   ;;  %s441_s28 = sshll.u32 %s2036_s4, 4  ;;  %s442_s28 = int_to_ptr.hbm [resolvable:$true] %s441_s28 }
  0x20   : > { %s1693_s17 = smov [#allocation2]   ;;  %s475_s16 = sshll.u32 %s2040_s8, 4  ;;  %s476_s16 = int_to_ptr.hbm [resolvable:$true] %s475_s16 }
  0x21   : > { %s1694_s25 = smov [#allocation7]  }
  0x22   : > { %s458_s29 = sshll.u32 %s2076_s6, 4  ;;  %s443_s6 = sshll.u32 %s1693_s17, 4  ;;  %s459_s29 = int_to_ptr.hbm [resolvable:$true] %s458_s29  ;;  %s444_s6 = int_to_ptr.vmem [resolvable:$true] %s443_s6 }
  0x23   : > { %1405 = dma.hbm_to_vmem [thread:$0]  (!%p1858_p13), %s459_s29, 256, %s461_s27, [#allocation6], %s1691_s19, %s1691_s19, %s1692_s23  }
  0x24   : > { %1402 = dma.hbm_to_vmem [thread:$0]  (!%p1858_p13), %s442_s28, 256, %s444_s6, [#allocation3], %s1691_s19, %s1691_s19, %s1692_s23  }
  0x25   : > { %s477_s14 = sshll.u32 %s1694_s25, 4  ;;  %531 = sbr.rel (%p1843_p10) target bundleno = 2195 (0x893), region = 84  ;;  %s478_s14 = int_to_ptr.vmem [resolvable:$true] %s477_s14 }
  0x26   : > { %1408 = dma.hbm_to_vmem [thread:$0]  (!%p1858_p13), %s476_s16, 256, %s478_s14, [#allocation6], %s1691_s19, %s1691_s19, %s1692_s23  }
  0x2a   : > { %1655 = dma.done.wait (%p1847_p11), [#allocation3], 256  }
  0x2b   : > { %1657 = vsyncadd (%p1847_p11), [#allocation3], 4294967040 }
  0x2c   : > { %1659 = dma.done.wait (%p1847_p11), [#allocation6], 512  }
  0x2d   : > { %1661 = vsyncadd (%p1847_p11), [#allocation6], 4294966784  ;;  %p598_p0 = scmp.lt.s32.totalorder %s1680_s24, 1  ;;  %s2078_s0 = sld [smem:[#allocation20_spill]]  ;;  %v1376_v0 = vld [vmem:[%s2034_s2 + $0x8] sm:$0xff]  ;;  %v1375_v2 = vld [vmem:[%s2034_s2] sm:$0xff] }
  0x2e   : > { %v1378_v1 = vld [vmem:[#allocation2 + $0x8] sm:$0xff]  ;;  %v1377_v3 = vld [vmem:[#allocation2] sm:$0xff]  ;;  %644 = vmatpush.bf16.msra.mxu0 %v1376_v0  ;;  %vm634_vm0 = vcmask 261120   ;;  %vm689_vm1 = vcmask 64512   ;;  %s1697_s15 = smov 104   ;;  %s1698_s16 = smov 112  }
  0x2f   : > { %s599_s6 = scalar_select %p598_p0, %s1680_s24, 1  ;;  %680 = vmatpush.bf16.msra.mxu1 %v1378_v1  ;;  %v1481_v8 = vld [vmem:[%s2035_s3] ss:$0 sm:$0xff]  ;;  %vm727_vm2 = vcmask 1043456   ;;  %v745_v19 = vld [vmem:[#allocation5] sm:$0xf] }
  0x30   : > { %v1482_v9 = vld [vmem:[%s2037_s5] ss:$0 sm:$0xff]  ;;  %v828_v20 = vsel %vm727_vm2, %v745_v19, 0  ;;  %s1700_s26 = smov 80   ;;  %s1701_s29 = smov 72   ;;  %vm1119_vm7 = vcmask 523264  }
  0x31   : > { %s1313_s14 = sshll.u32 %s599_s6, 3  ;;  %s1695_s6 = smov 120  }
  0x32   : > { %s608_s23 = scalar_lea.vmem %s2033_s1, %s1313_s14  ;;  %645 = vmatpush.bf16.msra.mxu0 %v1375_v2  ;;  %s1372_s20 = sshll.u32 %s1680_s24, 3 }
  0x33   : > { %s601_s18 = scalar_lea.vmem %s2078_s0, %s1313_s14  ;;  %v1898_v4 = vld [vmem:[%s608_s23] sm:$0xff]  ;;  %681 = vmatpush.bf16.msra.mxu1 %v1377_v3  ;;  %s1696_s14 = smov 96  }
  0x34   : > { %v610_v5 = vld [vmem:[%s601_s18] sm:$0xff]  ;;  %v612_v6 = vpack.c.bf16 %v1898_v4, %v1898_v4  ;;  %s1699_s23 = smov 88   ;;  %s595_s18 = sand.u32 1, %s1672_s22  }
  0x35   : > { %v613_v7 = vpack.c.bf16 %v610_v5, %v610_v5  ;;  %s1312_s19 = sshll.u32 %s595_s18, 3  ;;  %s2079_s27 = sld [smem:[#allocation22_spill]] }
  0x36   : > { %1323 = vmatmul.msk.bf16.vlgmr.msra.gmra.mxu0 %vm634_vm0, %v612_v6  ;;  %s2080_s25 = sld [smem:[#allocation24_spill]]  ;;  %s1171_s21 = scalar_lea.sflag [#allocation4], %s595_s18 }
  0x37   : > { %1332 = vmatmul.msk.bf16.vlgmr.msra.gmra.mxu1 %vm634_vm0, %v613_v7 }
  0xb3   : > { %v647_v10 = vpop.f32.mrf.mxu0 }
  0xb4   : > { %v683_v11 = vpop.f32.mrf.mxu1  ;;  %v648_v12 = vadd.f32 %v1481_v8, %v647_v10 }
  0xb5   : > { %v684_v13 = vadd.f32 %v1482_v9, %v683_v11 }
  0xb6   : > { %v687_v14 = vpack.c.bf16 %v648_v12, %v648_v12 }
  0xb7   : > { %v1910_v15 = vpack.c.bf16 %v684_v13, %v684_v13 }
  0xb8   : > { %747 = vrot.lane.b32.xlu2 %v687_v14, %s1695_s6 }
  0xb9   : > { %722 = vrot.lane.b32.xlu1 %v1910_v15, %s1696_s14  ;;  %v694_v16 = vsel %vm689_vm1, %v1910_v15, 0  ;;  %s1182_s14 = scalar_lea.hbm %s2080_s25, %s1372_s20 }
  0xba   : > { %703 = vmatpush.bf16.xpose.msra.mxu2 %v694_v16  ;;  %s1186_s0 = sshll.u32 %s1182_s14, 4  ;;  %s1187_s0 = int_to_ptr.hbm [resolvable:$true] %s1186_s0 }
  0xbb   : > { %v649_v17 = vpop.f32.mrf.mxu0  ;;  %s1616_s30 = sshra.s32 %s1187_s0, 4  ;;  %s1617_s30 = int_to_ptr.hbm [resolvable:$true] %s1616_s30 }
  0xbc   : > { %v685_v18 = vpop.f32.mrf.mxu1  ;;  %s1618_s20 = scalar_lea.hbm %s1617_s30, 8 }
  0xbd   : > { %p1619_p1 = scmp.ne.s32.totalorder %s1617_s30, %s1618_s20 }
  0xbf   : > { %p1620_p2 = pnand %p1619_p1, %p1828_p4 }
  0xc0   : > { %923 = vrot.lane.b32.xlu2 %v1910_v15, %s1697_s15 }
  0xc1   : > { %749 = vrot.lane.b32.xlu1 %v1910_v15, %s1695_s6  ;;  %1333 = vmatmul.msk.bf16.vlgmr.msra.gmra.mxu2 %vm689_vm1, %v687_v14  ;;  %s2081_s6 = smov %s2080_s25  ;;  %p1621_p3 = pneg %p1620_p2 }
  0xc2   : > { %837 = vmatpush.bf16.msrb.mxu2 %v828_v20  ;;  %p1623_p5 = scmp.lt.s32.totalorder %s1617_s30, %s2081_s6 }
  0xc8   : > { %843 = vrot.lane.b32.xlu2 %v687_v14, %s1698_s16 }
  0xc9   : > { %921 = vrot.lane.b32.xlu1 %v687_v14, %s1697_s15 }
 0x112   : > { %v748_v21 = vpop.permute.xlu2 %747 }
 0x11a   : > { %v924_v22 = vpop.permute.xlu2 %923 }
 0x11b   : > { %v929_v23 = vsel %vm689_vm1, %v924_v22, 0 }
 0x11c   : > { %938 = vmatpush.bf16.xpose.msra.mxu2 %v929_v23  ;;  %v804_v23 = vld [vmem:[#allocation5 + $0x4] sm:$0xf] }
 0x122   : > { %v844_v42 = vpop.permute.xlu2 %843 }
 0x12b   : > { %v723_v24 = vpop.permute.xlu1 %722 }
 0x12c   : > { %v729_v25 = vsel %vm727_vm2, %v723_v24, 0  ;;  %v809_v24 = vsel %vm727_vm2, %v804_v23, 0 }
 0x12d   : > { %738 = vmatpush.bf16.msra.mxu3 %v729_v25  ;;  %818 = vmatpush.bf16.msrb.mxu1 %v809_v24  ;;  %v900_v25 = vld [vmem:[#allocation5 + $0x8] sm:$0xf] }
 0x133   : > { %v750_v26 = vpop.permute.xlu1 %749 }
 0x134   : > { %v755_v27 = vsel %vm689_vm1, %v750_v26, 0 }
 0x135   : > { %764 = vmatpush.bf16.xpose.msrb.mxu3 %v755_v27  ;;  %v905_v27 = vsel %vm727_vm2, %v900_v25, 0  ;;  %v1382_v25 = vld [vmem:[%s2042_s10 + $0x8] sm:$0xff] }
 0x136   : > { %914 = vmatpush.bf16.msra.mxu1 %v905_v27  ;;  %v1486_v27 = vld [vmem:[%s2041_s9] ss:$0 sm:$0xff] }
 0x13b   : > { %v922_v48 = vpop.permute.xlu1 %921 }
 0x144   : > { %v705_v28 = vpop.f32.mrf.mxu2 }
 0x145   : > { %v709_v29 = vsel %vm689_vm1, %v705_v28, -inf }
 0x146   : > { %710 = vmax.xlane.f32.xlu0 %v709_v29 }
 0x14c   : > { %v707_v30 = vpop.f32.mrf.mxu2 }
 0x1b9   : > { %v711_v31 = vpop.xlane.xlu0 %710 }
 0x1ba   : > { %v712_v32 = vsub.f32 %v705_v28, %v711_v31 }
 0x1bc   : > { %v713_v33 = vmul.f32 1.442695, %v712_v32 }
 0x1be   : > { %1490 = vpow2.f32 %v713_v33 }
 0x1c4   : > { %v1491_v34 = vpop.eup %1490 }
 0x1c5   : > { %v715_v35 = vsel %vm689_vm1, %v1491_v34, 0.0 }
 0x1c6   : > { %716 = vadd.xlane.f32.xlu0 %v715_v35 }
 0x1da   : > { %845 = vrot.lane.b32.xlu0 %v1910_v15, %s1698_s16 }
 0x239   : > { %v717_v36 = vpop.xlane.xlu0 %716 }
 0x23a   : > { %1492 = vrcp.f32 %v717_v36 }
 0x240   : > { %v1493_v37 = vpop.eup %1492 }
 0x241   : > { %v719_v38 = vmul.f32 %v1493_v37, %v1491_v34 }
 0x243   : > { %v720_v39 = vpack.c.bf16 %v719_v38, %v719_v38  ;;  %v978_v38 = vld [vmem:[#allocation5 + $0xc] sm:$0xf] }
 0x245   : > { %1334 = vmatmul.msk.bf16.vlgmr.msra.gmra.mxu3 %vm689_vm1, %v720_v39  ;;  %v983_v39 = vsel %vm727_vm2, %v978_v38, 0 }
 0x24c   : > { %v846_v40 = vpop.permute.xlu0 %845 }
 0x24d   : > { %v851_v41 = vsel %vm689_vm1, %v846_v40, 0 }
 0x24e   : > { %860 = vmatpush.bf16.xpose.msra.mxu3 %v851_v41 }
 0x255   : > { %1335 = vmatmul.msk.bf16.vlgmr.msrb.gmra.mxu3 %vm689_vm1, %v748_v21 }
 0x265   : > { %1339 = vmatmul.msk.bf16.vlgmr.msra.gmra.mxu3 %vm689_vm1, %v844_v42 }
 0x2c8   : > { %v740_v43 = vpop.f32.mrf.mxu3 }
 0x2c9   : > { %v744_v44 = vpack.c.bf16 %v740_v43, %v740_v43 }
 0x2cb   : > { %1338 = vmatmul.msk.bf16.vlgmr.msrb.gmra.mxu2 %vm689_vm1, %v744_v44 }
 0x2d0   : > { %v742_v45 = vpop.f32.mrf.mxu3 }
 0x2d8   : > { %v766_v46 = vpop.f32.mrf.mxu3 }
 0x2d9   : > { %v770_v47 = vsel %vm689_vm1, %v766_v46, -inf }
 0x2da   : > { %771 = vmax.xlane.f32.xlu1 %v770_v47 }
 0x2db   : > { %1342 = vmatmul.msk.bf16.vlgmr.msra.gmra.mxu2 %vm689_vm1, %v922_v48 }
 0x2e0   : > { %v768_v49 = vpop.f32.mrf.mxu3 }
 0x2e1   : > { %v1483_v49 = vld [vmem:[%s2039_s7] ss:$0 sm:$0xff] }
 0x2e8   : > { %v862_v50 = vpop.f32.mrf.mxu3 }
 0x2e9   : > { %v866_v51 = vsel %vm689_vm1, %v862_v50, -inf }
 0x2ea   : > { %867 = vmax.xlane.f32.xlu0 %v866_v51 }
 0x2f0   : > { %v864_v52 = vpop.f32.mrf.mxu3 }
 0x2f3   : > { %782 = vrot.lane.b32.xlu1 %v1910_v15, %s1699_s23 }
 0x34d   : > { %v772_v54 = vpop.xlane.xlu1 %771 }
 0x34e   : > { %v1934_v53 = vpop.f32.mrf.mxu2  ;;  %v773_v55 = vsub.f32 %v766_v46, %v772_v54 }
 0x350   : > { %v774_v57 = vmul.f32 1.442695, %v773_v55 }
 0x352   : > { %1494 = vpow2.f32 %v774_v57  ;;  %v1702_v57 = vmov 32.0  }
 0x356   : > { %v841_v56 = vpop.f32.mrf.mxu2 }
 0x358   : > { %v1495_v63 = vpop.eup %1494 }
 0x359   : > { %v776_v3 = vsel %vm689_vm1, %v1495_v63, 0.0 }
 0x35d   : > { %v868_v58 = vpop.xlane.xlu0 %867 }
 0x35e   : > { %v869_v59 = vsub.f32 %v862_v50, %v868_v58  ;;  %v940_v60 = vpop.f32.mrf.mxu2 }
 0x35f   : > { %v944_v61 = vsel %vm689_vm1, %v940_v60, -inf }
 0x360   : > { %v870_v62 = vmul.f32 1.442695, %v869_v59  ;;  %945 = vmax.xlane.f32.xlu2 %v944_v61 }
 0x362   : > { %1496 = vpow2.f32 %v870_v62 }
 0x365   : > { %v783_v0 = vpop.permute.xlu1 %782 }
 0x366   : > { %v942_v1 = vpop.f32.mrf.mxu2  ;;  %v788_v2 = vsel %vm727_vm2, %v783_v0, 0 }
 0x367   : > { %797 = vmatpush.bf16.msrb.mxu0 %v788_v2 }
 0x368   : > { %v1497_v5 = vpop.eup %1496  ;;  %777 = vadd.xlane.f32.xlu2 %v776_v3 }
 0x369   : > { %v872_v6 = vsel %vm689_vm1, %v1497_v5, 0.0 }
 0x36a   : > { %873 = vadd.xlane.f32.xlu0 %v872_v6  ;;  %v1384_v6 = vld [vmem:[%s2042_s10 + $0x18] sm:$0xff] }
 0x36b   : > { %1127 = vmatpush.bf16.msrb.mxu2 %v1384_v6 }
 0x37e   : > { %878 = vrot.lane.b32.xlu0 %v1910_v15, %s1700_s26  ;;  %s2083_s26 = sld [smem:[#allocation23_spill]] }
 0x3d3   : > { %v946_v7 = vpop.xlane.xlu2 %945 }
 0x3d4   : > { %v947_v8 = vsub.f32 %v940_v60, %v946_v7 }
 0x3d6   : > { %v948_v9 = vmul.f32 1.442695, %v947_v8 }
 0x3d8   : > { %1498 = vpow2.f32 %v948_v9  ;;  %v1383_v9 = vld [vmem:[%s2042_s10 + $0x10] sm:$0xff] }
 0x3d9   : > { %1128 = vmatpush.bf16.msrb.mxu2 %v1383_v9 }
 0x3db   : > { %v778_v10 = vpop.xlane.xlu2 %777 }
 0x3dc   : > { %1500 = vrcp.f32 %v778_v10 }
 0x3dd   : > { %v874_v16 = vpop.xlane.xlu0 %873  ;;  %1129 = vmatpush.bf16.msrb.mxu2 %v1382_v25 }
 0x3de   : > { %v1499_v11 = vpop.eup %1498  ;;  %1502 = vrcp.f32 %v874_v16 }
 0x3df   : > { %v950_v12 = vsel %vm689_vm1, %v1499_v11, 0.0 }
 0x3e0   : > { %951 = vadd.xlane.f32.xlu2 %v950_v12 }
 0x3e2   : > { %v1501_v13 = vpop.eup %1500 }
 0x3e3   : > { %v780_v14 = vmul.f32 %v1501_v13, %v1495_v63 }
 0x3e4   : > { %v1503_v18 = vpop.eup %1502 }
 0x3e5   : > { %v781_v17 = vpack.c.bf16 %v780_v14, %v780_v14  ;;  %v876_v20 = vmul.f32 %v1503_v18, %v1497_v5  ;;  %v1379_v5 = vld [vmem:[#allocation7] sm:$0xff] }
 0x3e6   : > { %v1484_v18 = vld [vmem:[%s2044_s12] ss:$0 sm:$0xff] }
 0x3e7   : > { %1336 = vmatmul.msk.bf16.vlgmr.msrb.gmra.mxu0 %vm689_vm1, %v781_v17  ;;  %v877_v22 = vpack.c.bf16 %v876_v20, %v876_v20  ;;  %v1485_v20 = vld [vmem:[%s2045_s13] ss:$0 sm:$0xff] }
 0x3f0   : > { %v879_v19 = vpop.permute.xlu0 %878 }
 0x3f1   : > { %v884_v21 = vsel %vm727_vm2, %v879_v19, 0 }
 0x3f2   : > { %893 = vmatpush.bf16.msra.mxu0 %v884_v21 }
 0x3f6   : > { %992 = vmatpush.bf16.msrb.mxu0 %v983_v39 }
 0x3f7   : > { %1340 = vmatmul.msk.bf16.vlgmr.msra.gmra.mxu0 %vm689_vm1, %v877_v22 }
 0x3f8   : > { %956 = vrot.lane.b32.xlu2 %v1910_v15, %s1701_s29  ;;  %s597_s29 = scalar_lea.vmem [#allocation8], %s1312_s19  ;;  %s1622_s19 = scalar_lea.hbm %s2081_s6, 16 }
 0x3f9   : > { %s1184_s24 = sshll.u32 %s597_s29, 4  ;;  %p1624_p6 = scmp.lt.s32.totalorder %s1622_s19, %s1618_s20  ;;  %s1185_s24 = int_to_ptr.vmem [resolvable:$true] %s1184_s24 }
 0x3fb   : > { %p1625_p7 = por %p1624_p6, %p1623_p5 }
 0x3fd   : > { %p1626_p9 = pnand %p1625_p7, %p1621_p3 }
 0x453   : > { %v952_v26 = vpop.xlane.xlu2 %951 }
 0x454   : > { %1504 = vrcp.f32 %v952_v26  ;;  %v1381_v26 = vld [vmem:[%s2042_s10] sm:$0xff] }
 0x455   : > { %1506 = vrcp.f32 %v1702_v57  ;;  %1130 = vmatpush.bf16.msrb.mxu2 %v1381_v26 }
 0x45a   : > { %v1505_v28 = vpop.eup %1504 }
 0x45b   : > { %v954_v29 = vmul.f32 %v1505_v28, %v1499_v11  ;;  %v957_v30 = vpop.permute.xlu2 %956  ;;  %v1507_v58 = vpop.eup %1506 }
 0x45c   : > { %v962_v31 = vsel %vm727_vm2, %v957_v30, 0  ;;  %vm1015_vm3 = vweird.f32 %v1507_v58 }
 0x45d   : > { %v955_v32 = vpack.c.bf16 %v954_v29, %v954_v29  ;;  %971 = vmatpush.bf16.msrb.mxu3 %v962_v31 }
 0x460   : > { %1343 = vmatmul.msk.bf16.vlgmr.msrb.gmra.mxu3 %vm689_vm1, %v955_v32 }
 0x464   : > { %v799_v15 = vpop.f32.mrf.mxu0 }
 0x465   : > { %v803_v33 = vpack.c.bf16 %v799_v15, %v799_v15  ;;  %v1487_v15 = vld [vmem:[%s2043_s11] ss:$0 sm:$0xff] }
 0x467   : > { %1337 = vmatmul.msk.bf16.vlgmr.msrb.gmra.mxu1 %vm689_vm1, %v803_v33 }
 0x46c   : > { %v801_v34 = vpop.f32.mrf.mxu0 }
 0x474   : > { %v895_v35 = vpop.f32.mrf.mxu0 }
 0x475   : > { %v899_v36 = vpack.c.bf16 %v895_v35, %v895_v35 }
 0x477   : > { %1341 = vmatmul.msk.bf16.vlgmr.msra.gmra.mxu1 %vm689_vm1, %v899_v36 }
 0x47c   : > { %v897_v37 = vpop.f32.mrf.mxu0 }
 0x4e3   : > { %v973_v40 = vpop.f32.mrf.mxu3 }
 0x4e4   : > { %v977_v41 = vpack.c.bf16 %v973_v40, %v973_v40  ;;  %v820_v42 = vpop.f32.mrf.mxu1 }
 0x4e5   : > { %v840_v45 = vadd.f32 %v1934_v53, %v820_v42  ;;  %v1011_v53 = vmul.f32 32.0, %v1507_v58 }
 0x4e6   : > { %1344 = vmatmul.msk.bf16.vlgmr.msrb.gmra.mxu0 %vm689_vm1, %v977_v41 }
 0x4e7   : > { %v1012_v59 = vsub.f32 1.0, %v1011_v53 }
 0x4e9   : > { %v1013_v60 = vmul.f32 %v1507_v58, %v1012_v59 }
 0x4eb   : > { %v975_v43 = vpop.f32.mrf.mxu3  ;;  %v1014_v61 = vadd.f32 %v1507_v58, %v1013_v60 }
 0x4ec   : > { %v822_v44 = vpop.f32.mrf.mxu1 }
 0x4ed   : > { %v1016_v62 = vsel %vm1015_vm3, %v1507_v58, %v1014_v61 }
 0x4f4   : > { %v916_v46 = vpop.f32.mrf.mxu1 }
 0x4f5   : > { %v920_v47 = vadd.f32 %v916_v46, %v840_v45 }
 0x4fc   : > { %v918_v48 = vpop.f32.mrf.mxu1 }
 0x563   : > { %v994_v50 = vpop.f32.mrf.mxu0 }
 0x564   : > { %v998_v51 = vadd.f32 %v994_v50, %v920_v47 }
 0x566   : > { %v1003_v52 = vadd.f32 %v1483_v49, %v998_v51 }
 0x568   : > { %v1004_v54 = vadd.f32 %v1003_v52, %v1898_v4  ;;  %v1380_v4 = vld [vmem:[#allocation7 + $0x8] sm:$0xff]  ;;  %v1488_v52 = vld [vmem:[%s2079_s27] ss:$0 sm:$0xff] }
 0x569   : > { %1074 = vmatpush.bf16.msrb.mxu1 %v1380_v4 }
 0x56a   : > { %v1007_v55 = vsel %vm634_vm0, %v1004_v54, 0.0 }
 0x56b   : > { %1008 = vadd.xlane.f32.xlu1 %v1007_v55  ;;  %v996_v56 = vpop.f32.mrf.mxu0 }
 0x56c   : > { %v1489_v56 = vld [vmem:[%s2083_s26] ss:$0 sm:$0xff] }
 0x56d   : > { %1075 = vmatpush.bf16.msrb.mxu1 %v1379_v5 }
 0x5de   : > { %v1009_v63 = vpop.xlane.xlu1 %1008 }
 0x5df   : > { %v1017_v0 = vmul.f32 %v1016_v62, %v1009_v63 }
 0x5e1   : > { %v1018_v1 = vsub.f32 %v1004_v54, %v1017_v0 }
 0x5e3   : > { %v1019_v2 = vmul.f32 %v1018_v1, %v1018_v1 }
 0x5e5   : > { %v1020_v3 = vsel %vm634_vm0, %v1019_v2, 0.0 }
 0x5e6   : > { %1021 = vadd.xlane.f32.xlu2 %v1020_v3 }
 0x659   : > { %v1022_v7 = vpop.xlane.xlu2 %1021 }
 0x65a   : > { %v1023_v8 = vmul.f32 %v1022_v7, %v1016_v62 }
 0x65c   : > { %v1024_v10 = vadd.f32 1e-05, %v1023_v8 }
 0x65e   : > { %1508 = vrsqrt.f32 %v1024_v10  ;;  %vm1031_vm5 = vweird.f32 %v1024_v10 }
 0x664   : > { %v1509_v11 = vpop.eup %1508 }
 0x665   : > { %v1026_v12 = vmul.f32 %v1509_v11, %v1024_v10  ;;  %vm1032_vm4 = vweird.f32 %v1509_v11 }
 0x666   : > { %vm1033_vm6 = vmor %vm1031_vm5, %vm1032_vm4 }
 0x667   : > { %v1027_v13 = vmul.f32 %v1509_v11, %v1026_v12 }
 0x669   : > { %v1028_v14 = vmul.f32 0.5, %v1027_v13 }
 0x66b   : > { %v1029_v16 = vsub.f32 1.5, %v1028_v14 }
 0x66d   : > { %v1030_v17 = vmul.f32 %v1509_v11, %v1029_v16 }
 0x66f   : > { %v1034_v19 = vsel %vm1033_vm6, %v1509_v11, %v1030_v17 }
 0x670   : > { %v1035_v21 = vmul.f32 %v1034_v19, %v1018_v1 }
 0x672   : > { %v1039_v22 = vmul.f32 %v1484_v18, %v1035_v21 }
 0x674   : > { %v1043_v23 = vadd.f32 %v1485_v20, %v1039_v22 }
 0x676   : > { %v1044_v24 = vpack.c.bf16 %v1043_v23, %v1043_v23 }
 0x678   : > { %1353 = vmatmul.msk.bf16.vlgmr.msrb.gmra.mxu1 %vm634_vm0, %v1044_v24 }
 0x6f5   : > { %v1077_v28 = vpop.f32.mrf.mxu1 }
 0x6f6   : > { %v1078_v29 = vadd.f32 %v1486_v27, %v1077_v28 }
 0x6f8   : > { %v1081_v30 = vmax.f32 %v1078_v29, 0.0 }
 0x6fa   : > { %v1082_v31 = vpack.c.bf16 %v1081_v30, %v1081_v30 }
 0x6fc   : > { %1370 = vmatmul.msk.bf16.vlgmr.msrb.gmra.mxu2 %vm1119_vm7, %v1082_v31 }
 0x6fd   : > { %v1079_v32 = vpop.f32.mrf.mxu1 }
 0x77f   : > { %v1132_v33 = vpop.f32.mrf.mxu2 }
 0x780   : > { %v1133_v34 = vadd.f32 %v1487_v15, %v1132_v33 }
 0x782   : > { %v1136_v35 = vadd.f32 %v1133_v34, %v1043_v23 }
 0x784   : > { %v1139_v36 = vsel %vm634_vm0, %v1136_v35, 0.0 }
 0x785   : > { %1140 = vadd.xlane.f32.xlu0 %v1139_v36 }
 0x787   : > { %v1134_v37 = vpop.f32.mrf.mxu2 }
 0x7f8   : > { %v1141_v38 = vpop.xlane.xlu0 %1140 }
 0x7f9   : > { %v1142_v39 = vmul.f32 %v1141_v38, %v1016_v62 }
 0x7fb   : > { %v1143_v40 = vsub.f32 %v1136_v35, %v1142_v39 }
 0x7fd   : > { %v1144_v41 = vmul.f32 %v1143_v40, %v1143_v40 }
 0x7ff   : > { %v1145_v42 = vsel %vm634_vm0, %v1144_v41, 0.0 }
 0x800   : > { %1146 = vadd.xlane.f32.xlu1 %v1145_v42 }
 0x873   : > { %v1147_v43 = vpop.xlane.xlu1 %1146 }
 0x874   : > { %v1148_v44 = vmul.f32 %v1147_v43, %v1016_v62 }
 0x876   : > { %v1149_v45 = vadd.f32 1e-05, %v1148_v44 }
 0x878   : > { %1510 = vrsqrt.f32 %v1149_v45  ;;  %vm1156_vm9 = vweird.f32 %v1149_v45 }
 0x87e   : > { %v1511_v46 = vpop.eup %1510 }
 0x87f   : > { %v1151_v47 = vmul.f32 %v1511_v46, %v1149_v45  ;;  %vm1157_vm8 = vweird.f32 %v1511_v46 }
 0x880   : > { %vm1158_vm10 = vmor %vm1156_vm9, %vm1157_vm8 }
 0x881   : > { %v1152_v48 = vmul.f32 %v1511_v46, %v1151_v47 }
 0x883   : > { %v1153_v49 = vmul.f32 0.5, %v1152_v48 }
 0x885   : > { %v1154_v50 = vsub.f32 1.5, %v1153_v49 }
 0x887   : > { %v1155_v51 = vmul.f32 %v1511_v46, %v1154_v50 }
 0x889   : > { %v1159_v54 = vsel %vm1158_vm10, %v1511_v46, %v1155_v51 }
 0x88a   : > { %v1160_v55 = vmul.f32 %v1159_v54, %v1143_v40 }
 0x88c   : > { %v1164_v57 = vmul.f32 %v1488_v52, %v1160_v55 }
 0x88e   : > { %v1168_v58 = vadd.f32 %v1489_v56, %v1164_v57 }
 0x890   : > { %1169 = vst.msk [vmem:[%s597_s29] sm:$0xff] %vm634_vm0, %v1168_v58 }
 0x891   : > { %1629 = shalt.err (!%p1626_p9)
}
 0x892   : > { %1397 = dma.vmem_to_hbm [thread:$0]  (%p1828_p4), %s1185_s24, 128, %s1187_s0, %s1171_s21  }
 0x893 PF: > { %s2084_s18 = sld [smem:[#allocation15_spill]] }
 0x894   : > { %s2085_s14 = sld [smem:[#allocation12_spill]] }
 0x899   : > { %p1419_p10 = scmp.ge.s32.totalorder %s2084_s18, 2 }
 0x89a   : > { %s1198_s23 = sand.u32 1, %s2085_s14  }
 0x89b   : > { %p1410_p11 = pnand %p1419_p10, %p1835_p8  ;;  %s1199_s26 = scalar_lea.sflag [#allocation4], %s1198_s23 }
 0x89d   : > { %p1411_p12 = pneg %p1410_p11 }
 0x89f   : > { %1663 = dma.done.wait (%p1411_p12), %s1199_s26, 128  }
 0x8a0   : > { %1665 = vsyncadd (%p1411_p12), %s1199_s26, 4294967168  ;;  %s31_s26 = sadd.s32 1, %s2084_s18   ;;  %s2087_s29 = sld [smem:[#allocation13_spill]] }
 0x8a1   : > { %p28_p13 = scmp.ge.s32.totalorder %s31_s26, 4   ;;  %s2088_s23 = sld [smem:[#allocation19_spill]] }
 0x8a2   : > { %s2089_s24 = sld [smem:[#allocation14_spill]]  ;;  %s2091_s21 = smov %s1672_s22 }
 0x8a3   : > { %s2090_s25 = sld [smem:[#allocation16_spill]]  ;;  %30 = sbr.rel (!%p28_p13) target bundleno = 12 (0xc), region = 135 }
 0x8a6   : > { %s2092_s22 = smov %s2087_s29 }
 0x8a8   :  { %1205 = vsyncpa [#allocation3], 1 }
 0x8a9   :  { %1207 = vsyncpa [#allocation3 + $0x1], 1 }
 0x8aa   :  { %1208 = vsyncpa [#allocation6], 1 }
 0x8ab   :  { %1209 = vsyncpa [#allocation4], 1 }
 0x8ac   :  { %1211 = vsyncpa [#allocation4 + $0x1], 1 }

</bundles_post_ra>
